<compile_context>
chip_gen: v7x
topology: tpu7x:2x2x1
jax: 0.10.0
libtpu: 0.0.40
codegen_flags: <defaults>
</compile_context>

<pallas_src>
import functools

import jax
import jax.numpy as jnp
from jax.experimental import pallas as pl
from jax.experimental.pallas import tpu as pltpu

LN_EPS = 1e-5


def _embedding_ln_kernel(idx_ref, p_ref, w_ref, g_ref, gamma_ref, beta_ref,
                         o_ref, *, d_model):
    idx = idx_ref[...]                       # (TR, pack*4) f32 fused column ids
    P = p_ref[...]                           # (pack*4, K)  0/1 owner projection
    W = w_ref[...]                           # (K, pack*d_model) f32 block-diag table
    tr = idx.shape[0]
    K = W.shape[0]

    # Owner-projection matmul: P[j, c] = 1 iff column c is owned by packed field
    # j (ranges are disjoint), so sel[r, c] = idx[r, owner(c)].  All values are
    # small exact integers (< pack*V < 256), exact even at bf16 MXU precision.
    sel = jnp.dot(idx, P, preferred_element_type=jnp.float32)        # (TR, K)
    iota = jax.lax.broadcasted_iota(jnp.int32, (tr, K), 1).astype(jnp.float32)
    multihot = (sel == iota).astype(jnp.float32)                     # (TR, K)

    # One MXU matmul gathers and sums the four embeddings for all `pack` tokens
    # of a row (block-diagonal fused table).
    emb = jnp.dot(multihot, W, preferred_element_type=jnp.float32)   # (TR, pack*d)

    # LayerNorm over each d_model group within the 128-lane row.  Group sums
    # (already broadcast within the group) via a 0/1 block matrix on the MXU;
    # variance as E[x^2] - mean^2 (independent reductions).
    inv_d = jnp.float32(1.0 / d_model)
    G = g_ref[...]                                                   # (L, L) 0/1
    s1 = jnp.dot(emb, G, preferred_element_type=jnp.float32)
    s2 = jnp.dot(emb * emb, G, preferred_element_type=jnp.float32)
    mean = s1 * inv_d
    var = jnp.maximum(s2 * inv_d - mean * mean, 0.0)
    normed = (emb - mean) * jax.lax.rsqrt(var + LN_EPS)
    o_ref[...] = (normed * gamma_ref[...] + beta_ref[...]).astype(o_ref.dtype)


def embedding_forward(x, type_w, color_w, num_w, dup_w, gamma, beta, *,
                      tile_tokens=8192, out_dtype=jnp.float32):
    """x: (B, S, 4) int indices -> (B, S, d_model) in `out_dtype`."""
    B, S, nf = x.shape
    assert nf == 4
    d_model = type_w.shape[1]
    tables = [type_w, color_w, num_w, dup_w]
    vocabs = [t.shape[0] for t in tables]                 # (11, 11, 10, 10)

    # Pack `pack` tokens per 128-lane row so every vector op / store is lane-dense.
    if d_model <= 128 and 128 % d_model == 0:
        pack = 128 // d_model
    else:
        pack = 1
    lane_dim = pack * d_model

    # Fuse the four tables into one (row offsets per field), pad rows to x8.
    col_off = [0,
               vocabs[0],
               vocabs[0] + vocabs[1],
               vocabs[0] + vocabs[1] + vocabs[2]]
    total_vocab = sum(vocabs)
    V = ((total_vocab + 7) // 8) * 8
    fused = jnp.zeros((V, d_model), jnp.float32)
    for off, t in zip(col_off, tables):
        fused = fused.at[off:off + t.shape[0]].set(t.astype(jnp.float32))

    # Block-diagonal replication: token slot p uses rows [p*V, (p+1)*V) and
    # writes features into lanes [p*d_model, (p+1)*d_model).
    K = pack * V
    W = jnp.zeros((K, lane_dim), jnp.float32)
    for p in range(pack):
        W = W.at[p * V:(p + 1) * V, p * d_model:(p + 1) * d_model].set(fused)

    # Owner-projection matrix: P[j, c] = 1 iff column c belongs to packed field
    # j = p*4 + f, i.e. c in [p*V + col_off[f], p*V + col_off[f] + vocab_f).
    # Padded columns (>= total_vocab within each V-block) are owned by nobody.
    P = jnp.zeros((pack * 4, K), jnp.float32)
    for p in range(pack):
        for f in range(4):
            j = p * 4 + f
            start = p * V + col_off[f]
            P = P.at[j, start:start + vocabs[f]].set(1.0)

    # 0/1 group-sum matrix (lane i, lane j in the same d_model group).
    gid = jnp.arange(lane_dim, dtype=jnp.int32) // d_model
    G = (gid[:, None] == gid[None, :]).astype(jnp.float32)

    gamma_l = jnp.tile(gamma.astype(jnp.float32).reshape(1, d_model), (1, pack))
    beta_l = jnp.tile(beta.astype(jnp.float32).reshape(1, d_model), (1, pack))

    # Tile sizing: big tiles (amortize per-step overhead), multiple of 8 rows,
    # but keep at least 2 tiles when there is enough work so both v7x cores run.
    N = B * S
    rows = -(-N // pack)                                   # packed rows needed
    target_r = max(8, ((tile_tokens // pack) // 8) * 8)
    rows8 = ((rows + 7) // 8) * 8
    tile_r = min(target_r, rows8)
    if rows8 >= 16:
        tile_r = min(tile_r, max(8, ((rows8 // 2) // 8) * 8))
    rows_p = ((rows + tile_r - 1) // tile_r) * tile_r
    n_tok_p = rows_p * pack

    # Token indices -> fused / block-diagonal column ids, `pack` tokens per row.
    # Cast to f32 host-side (values < 256, exact) so the kernel feeds the MXU
    # directly with no in-kernel convert.
    idx = x.reshape(N, 4).astype(jnp.int32)
    if n_tok_p != N:
        idx = jnp.concatenate([idx, jnp.zeros((n_tok_p - N, 4), jnp.int32)], 0)
    idx = idx + jnp.asarray(col_off, jnp.int32)[None, :]
    idx = (idx.reshape(rows_p, pack, 4)
           + (jnp.arange(pack, dtype=jnp.int32) * V)[None, :, None])
    idx = idx.reshape(rows_p, pack * 4).astype(jnp.float32)

    const = lambda i: (0, 0)
    # Note: W/P/G/gamma/beta have constant index_maps so they are DMA'd once;
    # single-buffering them would only save ~200 KB of VMEM bookkeeping.
    out = pl.pallas_call(
        functools.partial(_embedding_ln_kernel, d_model=d_model),
        out_shape=jax.ShapeDtypeStruct((rows_p, lane_dim), out_dtype),
        grid_spec=pltpu.PrefetchScalarGridSpec(
            num_scalar_prefetch=0,
            grid=(rows_p // tile_r,),
            in_specs=[
                pl.BlockSpec((tile_r, pack * 4), lambda i: (i, 0)),   # packed ids
                pl.BlockSpec(P.shape, const),                          # owner projection
                pl.BlockSpec(W.shape, const),                          # fused table
                pl.BlockSpec(G.shape, const),                          # group-sum 0/1
                pl.BlockSpec((1, lane_dim), const),                    # LN gamma (tiled)
                pl.BlockSpec((1, lane_dim), const),                    # LN beta  (tiled)
            ],
            out_specs=pl.BlockSpec((tile_r, lane_dim), lambda i: (i, 0)),
        ),
        compiler_params=pltpu.CompilerParams(
            dimension_semantics=("parallel",)),
    )(idx, P, W, G, gamma_l, beta_l)

    # (rows_p, pack*d) -> (rows_p*pack, d) is a free row-major reinterpretation.
    return out.reshape(rows_p * pack, d_model)[:N].reshape(B, S, d_model)


def _reference(x, type_w, color_w, num_w, dup_w, gamma, beta):
    emb = (type_w[x[:, :, 0]] + color_w[x[:, :, 1]]
           + num_w[x[:, :, 2]] + dup_w[x[:, :, 3]])
    mean = emb.mean(-1, keepdims=True)
    var = ((emb - mean) ** 2).mean(-1, keepdims=True)
    return (emb - mean) * jax.lax.rsqrt(var + LN_EPS) * gamma + beta


if __name__ == "__main__":
    d_model = 32
    B, S = 2, 8          # maxlen-like sequence length

    key = jax.random.PRNGKey(0)
    k_t, k_c, k_n, k_d, k_x = jax.random.split(key, 5)

    # nn.Embedding default init: N(0, 1); padding_idx=0 row is zero.
    def make_table(k, vocab):
        w = jax.random.normal(k, (vocab, d_model), jnp.float32)
        return w.at[0].set(0.0)

    type_w = make_table(k_t, 11)
    color_w = make_table(k_c, 11)
    num_w = make_table(k_n, 10)
    dup_w = make_table(k_d, 10)

    # nn.LayerNorm default init: weight=1, bias=0.
    gamma = jnp.ones((d_model,), jnp.float32)
    beta = jnp.zeros((d_model,), jnp.float32)

    # integer indices in valid ranges per column: [0,11), [0,11), [0,10), [0,10)
    maxvals = jnp.array([11, 11, 10, 10], dtype=jnp.int32)
    raw = jax.random.randint(k_x, (B, S, 4), 0, 1_000_000, dtype=jnp.int32)
    x = raw % maxvals

    out = embedding_forward(x, type_w, color_w, num_w, dup_w, gamma, beta)
    out = jax.block_until_ready(out)

    ref = _reference(x, type_w, color_w, num_w, dup_w, gamma, beta)
    assert out.shape == (B, S, d_model)
    assert jnp.allclose(out, ref, atol=1e-4, rtol=1e-4), "mismatch vs reference"
    print("KERNEL_OK")
</pallas_src>

<mosaic_0001>
module attributes {stable_mosaic.version = 11 : i64} {
  func.func @_embedding_ln_kernel(%arg0: i32, %arg1: memref<8x16xf32, #tpu.memory_space<vmem>>, %arg2: memref<16x192xf32, #tpu.memory_space<vmem>>, %arg3: memref<192x128xf32, #tpu.memory_space<vmem>>, %arg4: memref<128x128xf32, #tpu.memory_space<vmem>>, %arg5: memref<1x128xf32, #tpu.memory_space<vmem>>, %arg6: memref<1x128xf32, #tpu.memory_space<vmem>>, %arg7: memref<8x128xf32, #tpu.memory_space<vmem>>) attributes {dimension_semantics = [#tpu.dimension_semantics<parallel>], iteration_bounds = array<i64: 1>, scalar_prefetch = 0 : i64, scratch_operands = 0 : i64, tpu.core_type = #tpu.core_type<tc>, window_params = [{transform_indices = @transform_0, window_bounds = array<i64: 8, 16>}, {pipeline_mode = #tpu.pipeline_mode<synchronous>, transform_indices = @transform_1, window_bounds = array<i64: 16, 192>}, {pipeline_mode = #tpu.pipeline_mode<synchronous>, transform_indices = @transform_2, window_bounds = array<i64: 192, 128>}, {pipeline_mode = #tpu.pipeline_mode<synchronous>, transform_indices = @transform_3, window_bounds = array<i64: 128, 128>}, {pipeline_mode = #tpu.pipeline_mode<synchronous>, transform_indices = @transform_4, window_bounds = array<i64: 1, 128>}, {pipeline_mode = #tpu.pipeline_mode<synchronous>, transform_indices = @transform_5, window_bounds = array<i64: 1, 128>}, {transform_indices = @transform_6, window_bounds = array<i64: 8, 128>}]} {
    %c0 = arith.constant 0 : index
    %c0_0 = arith.constant 0 : index
    %0 = vector.load %arg1[%c0, %c0_0] : memref<8x16xf32, #tpu.memory_space<vmem>>, vector<8x16xf32>
    %c0_1 = arith.constant 0 : index
    %c0_2 = arith.constant 0 : index
    %1 = vector.load %arg2[%c0_1, %c0_2] : memref<16x192xf32, #tpu.memory_space<vmem>>, vector<16x192xf32>
    %c0_3 = arith.constant 0 : index
    %c0_4 = arith.constant 0 : index
    %2 = vector.load %arg3[%c0_3, %c0_4] : memref<192x128xf32, #tpu.memory_space<vmem>>, vector<192x128xf32>
    %cst = arith.constant dense<0.000000e+00> : vector<8x192xf32>
    %3 = tpu.matmul %0, %1, %cst {dimension_numbers = #tpu.dot_dimension_numbers<[1], [0], [0], [1], [0, 0, 1, 1], [], []>} : vector<8x16xf32>, vector<16x192xf32>, vector<8x192xf32> -> vector<8x192xf32>
    %4 = tpu.iota {dimensions = array<i32: 1>} : vector<8x192xi32>
    %5 = arith.sitofp %4 : vector<8x192xi32> to vector<8x192xf32>
    %6 = arith.cmpf oeq, %3, %5 : vector<8x192xf32>
    %7 = arith.extui %6 : vector<8x192xi1> to vector<8x192xi32>
    %8 = arith.sitofp %7 : vector<8x192xi32> to vector<8x192xf32>
    %cst_5 = arith.constant dense<0.000000e+00> : vector<8x128xf32>
    %9 = tpu.matmul %8, %2, %cst_5 {dimension_numbers = #tpu.dot_dimension_numbers<[1], [0], [0], [1], [0, 0, 1, 1], [], []>} : vector<8x192xf32>, vector<192x128xf32>, vector<8x128xf32> -> vector<8x128xf32>
    %c0_6 = arith.constant 0 : index
    %c0_7 = arith.constant 0 : index
    %10 = vector.load %arg4[%c0_6, %c0_7] : memref<128x128xf32, #tpu.memory_space<vmem>>, vector<128x128xf32>
    %cst_8 = arith.constant dense<0.000000e+00> : vector<8x128xf32>
    %11 = tpu.matmul %9, %10, %cst_8 {dimension_numbers = #tpu.dot_dimension_numbers<[1], [0], [0], [1], [0, 0, 1, 1], [], []>} : vector<8x128xf32>, vector<128x128xf32>, vector<8x128xf32> -> vector<8x128xf32>
    %12 = arith.mulf %9, %9 : vector<8x128xf32>
    %cst_9 = arith.constant dense<0.000000e+00> : vector<8x128xf32>
    %13 = tpu.matmul %12, %10, %cst_9 {dimension_numbers = #tpu.dot_dimension_numbers<[1], [0], [0], [1], [0, 0, 1, 1], [], []>} : vector<8x128xf32>, vector<128x128xf32>, vector<8x128xf32> -> vector<8x128xf32>
    %cst_10 = arith.constant 3.125000e-02 : f32
    %14 = vector.broadcast %cst_10 : f32 to vector<8x128xf32>
    %15 = arith.mulf %11, %14 : vector<8x128xf32>
    %cst_11 = arith.constant 3.125000e-02 : f32
    %16 = vector.broadcast %cst_11 : f32 to vector<8x128xf32>
    %17 = arith.mulf %13, %16 : vector<8x128xf32>
    %18 = arith.mulf %15, %15 : vector<8x128xf32>
    %19 = arith.subf %17, %18 : vector<8x128xf32>
    %cst_12 = arith.constant 0.000000e+00 : f32
    %20 = vector.broadcast %cst_12 : f32 to vector<8x128xf32>
    %21 = arith.maximumf %19, %20 : vector<8x128xf32>
    %22 = arith.subf %9, %15 : vector<8x128xf32>
    %cst_13 = arith.constant 9.99999974E-6 : f32
    %23 = vector.broadcast %cst_13 : f32 to vector<8x128xf32>
    %24 = arith.addf %21, %23 : vector<8x128xf32>
    %25 = math.rsqrt %24 : vector<8x128xf32>
    %26 = arith.mulf %22, %25 : vector<8x128xf32>
    %c0_14 = arith.constant 0 : index
    %c0_15 = arith.constant 0 : index
    %27 = vector.load %arg5[%c0_14, %c0_15] : memref<1x128xf32, #tpu.memory_space<vmem>>, vector<1x128xf32>
    %28 = vector.broadcast %27 : vector<1x128xf32> to vector<8x128xf32>
    %29 = arith.mulf %26, %28 : vector<8x128xf32>
    %c0_16 = arith.constant 0 : index
    %c0_17 = arith.constant 0 : index
    %30 = vector.load %arg6[%c0_16, %c0_17] : memref<1x128xf32, #tpu.memory_space<vmem>>, vector<1x128xf32>
    %31 = vector.broadcast %30 : vector<1x128xf32> to vector<8x128xf32>
    %32 = arith.addf %29, %31 : vector<8x128xf32>
    %c0_18 = arith.constant 0 : index
    %c0_19 = arith.constant 0 : index
    %33 = vector.load %arg7[%c0_18, %c0_19] : memref<8x128xf32, #tpu.memory_space<vmem>>, vector<8x128xf32>
    tpu.vector_store %arg7[%c0_18, %c0_19], %32 {strides = array<i32>} : memref<8x128xf32, #tpu.memory_space<vmem>>, vector<8x128xf32>,
    return
  }
  func.func @transform_0(%arg0: i32) -> (i32, i32) {
    %c0_i32 = arith.constant 0 : i32
    %c0_i32_0 = arith.constant 0 : i32
    return %arg0, %c0_i32 : i32, i32
  }
  func.func @transform_1(%arg0: i32) -> (i32, i32) {
    %c0_i32 = arith.constant 0 : i32
    %c0_i32_0 = arith.constant 0 : i32
    %c0_i32_1 = arith.constant 0 : i32
    return %c0_i32, %c0_i32_0 : i32, i32
  }
  func.func @transform_2(%arg0: i32) -> (i32, i32) {
    %c0_i32 = arith.constant 0 : i32
    %c0_i32_0 = arith.constant 0 : i32
    %c0_i32_1 = arith.constant 0 : i32
    return %c0_i32, %c0_i32_0 : i32, i32
  }
  func.func @transform_3(%arg0: i32) -> (i32, i32) {
    %c0_i32 = arith.constant 0 : i32
    %c0_i32_0 = arith.constant 0 : i32
    %c0_i32_1 = arith.constant 0 : i32
    return %c0_i32, %c0_i32_0 : i32, i32
  }
  func.func @transform_4(%arg0: i32) -> (i32, i32) {
    %c0_i32 = arith.constant 0 : i32
    %c0_i32_0 = arith.constant 0 : i32
    %c0_i32_1 = arith.constant 0 : i32
    return %c0_i32, %c0_i32_0 : i32, i32
  }
  func.func @transform_5(%arg0: i32) -> (i32, i32) {
    %c0_i32 = arith.constant 0 : i32
    %c0_i32_0 = arith.constant 0 : i32
    %c0_i32_1 = arith.constant 0 : i32
    return %c0_i32, %c0_i32_0 : i32, i32
  }
  func.func @transform_6(%arg0: i32) -> (i32, i32) {
    %c0_i32 = arith.constant 0 : i32
    %c0_i32_0 = arith.constant 0 : i32
    return %arg0, %c0_i32 : i32, i32
  }
}

</mosaic_0001>

<bundles_post_ra>
// kernel: tpu_custom_call.1
= control target key start
LH: loop header
LB: loop body
LE: loop exit
PB: predicated region body
PF: predicated region fallthrough
CT: control target
= control target key end

     0   :  { %11 = vsyncpa [#allocation3], 0  ;;  %s944_s0 = inlined_call_operand.hbm [shape: f32[8,16], index: 0, kind: input, shape index: {}]   ;;  %s945_s1 = inlined_call_operand.hbm [shape: f32[16,192], index: 1, kind: input, shape index: {}]   ;;  %s946_s2 = inlined_call_operand.hbm [shape: f32[192,128], index: 2, kind: input, shape index: {}]   ;;  %s947_s3 = inlined_call_operand.hbm [shape: f32[128,128], index: 3, kind: input, shape index: {}]   ;;  %s948_s4 = inlined_call_operand.vmem [shape: f32[1,128], index: 4, kind: input, shape index: {}]   ;;  %s949_s5 = inlined_call_operand.vmem [shape: f32[1,128], index: 5, kind: input, shape index: {}]   ;;  %s950_s6 = inlined_call_operand.hbm [shape: f32[8,128], index: 6, kind: output, shape index: {}]  }
   0x1   :  { %12 = vsyncpa [#allocation6], 0 }
   0x2   :  { %13 = vsyncpa [#allocation9], 0 }
   0x3   :  { %14 = vsyncpa [#allocation4], 0  ;;  %s798_s21 = smov [#allocation5]   ;;  %s680_s25 = scalar_lea.hbm %s945_s1, 512 }
   0x4   :  { %s30_s22 = sshll.u32 %s798_s21, 4  ;;  %p681_p0 = scmp.ne.s32.totalorder %s945_s1, %s680_s25  ;;  %s31_s22 = int_to_ptr.vmem [resolvable:$true] %s30_s22 }
   0x5   :  { %p684_p1 = scmp.lt.u32.totalorder %s680_s25, %s945_s1 }
   0x7   :  { %p686_p2 = pnand %p684_p1, %p681_p0 }
   0x9   :  { %689 = shalt.err (!%p686_p2)
}
   0xa   :  { %s690_s30 = scalar_lea.vmem %s31_s22, 512  ;;  %p695_p4 = scmp.lt.s32.totalorder %s31_s22, %s31_s22 }
   0xb   :  { %p691_p3 = scmp.ne.s32.totalorder %s31_s22, %s690_s30  ;;  %p696_p5 = scmp.lt.s32.totalorder %s690_s30, %s690_s30 }
   0xd   :  { %p697_p6 = por %p696_p5, %p695_p4 }
   0xf   :  { %p698_p7 = pnand %p697_p6, %p691_p3 }
  0x11   :  { %701 = shalt.err (!%p698_p7)
}
  0x12   :  { %s799_s7 = smov 256   ;;  %s800_s8 = smov 16  }
  0x13   :  { %36 = dma.hbm_to_vmem [thread:$0]  %s945_s1, 512, %s31_s22, [#allocation6], %s799_s7, %s799_s7, %s800_s8  }
  0x14   :  { %s801_s11 = smov [#allocation2]   ;;  %s802_s13 = smov [#allocation7]  }
  0x15   :  { %s21_s12 = sshll.u32 %s801_s11, 4  ;;  %s42_s14 = sshll.u32 %s802_s13, 4  ;;  %s22_s12 = int_to_ptr.vmem [resolvable:$true] %s21_s12  ;;  %s43_s14 = int_to_ptr.vmem [resolvable:$true] %s42_s14 }
  0x16   :  { %s702_s17 = scalar_lea.hbm %s944_s0, 128 }
  0x17   :  { %p703_p8 = scmp.ne.s32.totalorder %s944_s0, %s702_s17  ;;  %p706_p9 = scmp.lt.u32.totalorder %s702_s17, %s944_s0 }
  0x19   :  { %p708_p10 = pnand %p706_p9, %p703_p8 }
  0x1b   :  { %711 = shalt.err (!%p708_p10)
}
  0x1c   :  { %s712_s1 = scalar_lea.vmem %s22_s12, 128  ;;  %p717_p12 = scmp.lt.s32.totalorder %s22_s12, %s22_s12 }
  0x1d   :  { %p713_p11 = scmp.ne.s32.totalorder %s22_s12, %s712_s1  ;;  %p718_p13 = scmp.lt.s32.totalorder %s712_s1, %s712_s1 }
  0x1f   :  { %p719_p0 = por %p718_p13, %p717_p12 }
  0x21   :  { %p720_p1 = pnand %p719_p0, %p713_p11 }
  0x23   :  { %723 = shalt.err (!%p720_p1)
}
  0x24   :  { %24 = dma.hbm_to_vmem [thread:$0]  %s944_s0, 128, %s22_s12, [#allocation3]  }
  0x25   :  { %s724_s26 = scalar_lea.hbm %s946_s2, 3072 }
  0x26   :  { %p725_p2 = scmp.ne.s32.totalorder %s946_s2, %s724_s26  ;;  %p728_p3 = scmp.lt.u32.totalorder %s724_s26, %s946_s2 }
  0x28   :  { %p730_p4 = pnand %p728_p3, %p725_p2 }
  0x2a   :  { %733 = shalt.err (!%p730_p4)
}
  0x2b   :  { %s734_s7 = scalar_lea.vmem %s43_s14, 3072  ;;  %p739_p6 = scmp.lt.s32.totalorder %s43_s14, %s43_s14 }
  0x2c   :  { %p735_p5 = scmp.ne.s32.totalorder %s43_s14, %s734_s7  ;;  %p740_p7 = scmp.lt.s32.totalorder %s734_s7, %s734_s7 }
  0x2e   :  { %p741_p8 = por %p740_p7, %p739_p6 }
  0x30   :  { %p742_p9 = pnand %p741_p8, %p735_p5 }
  0x32   :  { %745 = shalt.err (!%p742_p9)
}
  0x33   :  { %s803_s0 = smov 128   ;;  %s804_s8 = smov 8  }
  0x34   :  { %48 = dma.hbm_to_vmem [thread:$0]  %s946_s2, 3072, %s43_s14, [#allocation6], %s803_s0, %s803_s0, %s804_s8  }
  0x35   :  { %s805_s11 = smov [#allocation8]   ;;  %s746_s16 = scalar_lea.hbm %s947_s3, 2048 }
  0x36   :  { %s54_s12 = sshll.u32 %s805_s11, 4  ;;  %p747_p10 = scmp.ne.s32.totalorder %s947_s3, %s746_s16  ;;  %s55_s12 = int_to_ptr.vmem [resolvable:$true] %s54_s12 }
  0x37   :  { %p750_p11 = scmp.lt.u32.totalorder %s746_s16, %s947_s3 }
  0x39   :  { %p752_p12 = pnand %p750_p11, %p747_p10 }
  0x3b   :  { %755 = shalt.err (!%p752_p12)
}
  0x3c   :  { %s756_s21 = scalar_lea.vmem %s55_s12, 2048  ;;  %p761_p0 = scmp.lt.s32.totalorder %s55_s12, %s55_s12 }
  0x3d   :  { %p757_p13 = scmp.ne.s32.totalorder %s55_s12, %s756_s21  ;;  %p762_p1 = scmp.lt.s32.totalorder %s756_s21, %s756_s21 }
  0x3f   :  { %p763_p2 = por %p762_p1, %p761_p0 }
  0x41   :  { %p764_p3 = pnand %p763_p2, %p757_p13 }
  0x43   :  { %767 = shalt.err (!%p764_p3)
}
  0x44   :  { %60 = dma.hbm_to_vmem [thread:$0]  %s947_s3, 2048, %s55_s12, [#allocation9], %s803_s0, %s803_s0, %s804_s8  }
  0x45   :  { %790 = dma.done.wait [#allocation3], 128  }
  0x46   :  { %791 = vsyncadd [#allocation3], 4294967168 }
  0x47   :  { %792 = dma.done.wait [#allocation6], 3584  }
  0x48   :  { %793 = vsyncadd [#allocation6], 4294963712 }
  0x49   :  { %794 = dma.done.wait [#allocation9], 2048  }
  0x4a   :  { %795 = vsyncadd [#allocation9], 4294965248  ;;  %v806_v0 = vmov 0.0   ;;  %v807_v1 = vmov 0.0|0.0   ;;  %v79_v2 = vld [vmem:[#allocation5 + $0x8] sm:$0xff]  ;;  %v81_v3 = vld [vmem:[#allocation5 + $0x18] sm:$0xff] }
  0x4b   :  { %174 = vmatprep.mubr.f32.mxu1 %v806_v0  ;;  %617 = vmatprep.subr.bf16.mxu0 %v807_v1  ;;  %v78_v4 = vld [vmem:[#allocation5] sm:$0xff]  ;;  %v577_v5 = vpack.c.bf16 %v81_v3, %v79_v2  ;;  %v80_v6 = vld [vmem:[#allocation5 + $0x10] sm:$0xff]  ;;  %v83_v9 = vld [vmem:[#allocation7 + $0x8] sm:$0xff]  ;;  %vm106_vm0 = vcmask 130048   ;;  %vm192_vm1 = vcmask 523264   ;;  %vm809_vm4 = vmmov 0  }
  0x4c   :  { %v82_v7 = vld [vmem:[#allocation7] sm:$0xff]  ;;  %v579_v8 = vpack.c.bf16 %v80_v6, %v78_v4  ;;  %v77_v10 = vld [vmem:[#allocation2] sm:$0xff]  ;;  %v84_v12 = vld [vmem:[#allocation7 + $0x10] sm:$0xff]  ;;  %539 = vmatprep.mubr.msk.f32.mxu0 %vm809_vm4, %v806_v0  ;;  %s810_s24 = smov [#allocation10]  }
  0x4d   :  { %578 = vmatprep.subr.bf16.mxu1 %v577_v5  ;;  %v582_v11 = vpack.c.bf16 %v83_v9, %v82_v7  ;;  %v85_v13 = vld [vmem:[#allocation7 + $0x18] sm:$0xff]  ;;  %v86_v15 = vld [vmem:[#allocation7 + $0x20] sm:$0xff]  ;;  %v87_v16 = vld [vmem:[#allocation7 + $0x28] sm:$0xff]  ;;  %v181_v7 = vlaneseq  ;;  %s455_s25 = sshll.u32 %s810_s24, 4  ;;  %s456_s25 = int_to_ptr.vmem [resolvable:$true] %s455_s25 }
  0x4e   :  { %580 = vmatpush1.bf16.msra.mxu1 %v579_v8  ;;  %v585_v14 = vpack.c.bf16 %v85_v13, %v84_v12  ;;  %v588_v17 = vpack.c.bf16 %v87_v16, %v86_v15  ;;  %v88_v18 = vld [vmem:[#allocation7 + $0x30] sm:$0xff]  ;;  %v89_v19 = vld [vmem:[#allocation7 + $0x38] sm:$0xff]  ;;  %v90_v21 = vld [vmem:[#allocation7 + $0x40] sm:$0xff]  ;;  %v808_v15 = vmov 1.0   ;;  %s768_s26 = scalar_lea.vmem %s456_s25, 128  ;;  %p773_p5 = scmp.lt.s32.totalorder %s456_s25, %s456_s25 }
  0x4f   :  { %581 = vmatprep.subr.bf16.mxu1 %v807_v1  ;;  %v591_v20 = vpack.c.bf16 %v89_v19, %v88_v18  ;;  %v91_v22 = vld [vmem:[#allocation7 + $0x48] sm:$0xff]  ;;  %v92_v24 = vld [vmem:[#allocation7 + $0x50] sm:$0xff]  ;;  %v93_v25 = vld [vmem:[#allocation7 + $0x58] sm:$0xff]  ;;  %v182_v8 = vand.u32 127, %v181_v7  ;;  %p769_p4 = scmp.ne.s32.totalorder %s456_s25, %s768_s26  ;;  %p774_p6 = scmp.lt.s32.totalorder %s768_s26, %s768_s26 }
  0x50   :  { %v594_v23 = vpack.c.bf16 %v91_v22, %v90_v21  ;;  %v597_v26 = vpack.c.bf16 %v93_v25, %v92_v24  ;;  %v94_v27 = vld [vmem:[#allocation7 + $0x60] sm:$0xff]  ;;  %v95_v28 = vld [vmem:[#allocation7 + $0x68] sm:$0xff]  ;;  %v96_v30 = vld [vmem:[#allocation7 + $0x70] sm:$0xff] }
  0x51   :  { %466 = vmatmul.mubr.msk.f32.vlgmr.msra.gmra.mrb[0].mxu1 %vm106_vm0, %v77_v10  ;;  %v600_v29 = vpack.c.bf16 %v95_v28, %v94_v27  ;;  %v97_v31 = vld [vmem:[#allocation7 + $0x78] sm:$0xff]  ;;  %v98_v33 = vld [vmem:[#allocation7 + $0x80] sm:$0xff]  ;;  %v99_v34 = vld [vmem:[#allocation7 + $0x88] sm:$0xff]  ;;  %v183_v9 = vadd.s32 128, %v182_v8  ;;  %v184_v12 = vcvt.s32.f32 %v182_v8  ;;  %p775_p7 = por %p774_p6, %p773_p5 }
  0x52   :  { %583 = vmatpush1.bf16.msra.mxu1 %v582_v11  ;;  %v603_v32 = vpack.c.bf16 %v97_v31, %v96_v30  ;;  %v606_v35 = vpack.c.bf16 %v99_v34, %v98_v33  ;;  %v100_v36 = vld [vmem:[#allocation7 + $0x90] sm:$0xff]  ;;  %v101_v37 = vld [vmem:[#allocation7 + $0x98] sm:$0xff]  ;;  %v102_v39 = vld [vmem:[#allocation7 + $0xa0] sm:$0xff] }
  0x53   :  { %584 = vmatprep.subr.bf16.mxu1 %v807_v1  ;;  %v609_v38 = vpack.c.bf16 %v101_v37, %v100_v36  ;;  %v103_v40 = vld [vmem:[#allocation7 + $0xa8] sm:$0xff]  ;;  %v104_v42 = vld [vmem:[#allocation7 + $0xb0] sm:$0xff]  ;;  %v105_v43 = vld [vmem:[#allocation7 + $0xb8] sm:$0xff]  ;;  %v185_v10 = vcvt.s32.f32 %v183_v9  ;;  %p776_p8 = pnand %p775_p7, %p769_p4 }
  0x54   :  { %v612_v41 = vpack.c.bf16 %v103_v40, %v102_v39  ;;  %v615_v44 = vpack.c.bf16 %v105_v43, %v104_v42  ;;  %v266_v45 = vld [vmem:[#allocation8] sm:$0xff]  ;;  %v267_v46 = vld [vmem:[#allocation8 + $0x8] sm:$0xff]  ;;  %v268_v47 = vld [vmem:[#allocation8 + $0x10] sm:$0xff] }
  0x55   :  { %v618_v48 = vpack.c.bf16 %v267_v46, %v266_v45  ;;  %v269_v49 = vld [vmem:[#allocation8 + $0x18] sm:$0xff]  ;;  %v270_v51 = vld [vmem:[#allocation8 + $0x20] sm:$0xff]  ;;  %v271_v52 = vld [vmem:[#allocation8 + $0x28] sm:$0xff] }
  0x56   :  { %586 = vmatpush1.bf16.msra.mxu1 %v585_v14  ;;  %v621_v50 = vpack.c.bf16 %v269_v49, %v268_v47  ;;  %v624_v53 = vpack.c.bf16 %v271_v52, %v270_v51  ;;  %v272_v54 = vld [vmem:[#allocation8 + $0x30] sm:$0xff]  ;;  %v273_v55 = vld [vmem:[#allocation8 + $0x38] sm:$0xff]  ;;  %v274_v57 = vld [vmem:[#allocation8 + $0x40] sm:$0xff] }
  0x57   :  { %587 = vmatprep.subr.bf16.mxu1 %v807_v1  ;;  %619 = vmatpush3.bf16.msra.mxu0 %v618_v48  ;;  %v627_v56 = vpack.c.bf16 %v273_v55, %v272_v54  ;;  %v275_v58 = vld [vmem:[#allocation8 + $0x48] sm:$0xff]  ;;  %v276_v60 = vld [vmem:[#allocation8 + $0x50] sm:$0xff]  ;;  %v277_v61 = vld [vmem:[#allocation8 + $0x58] sm:$0xff] }
  0x58   :  { %620 = vmatprep.subr.bf16.mxu0 %v807_v1  ;;  %v630_v59 = vpack.c.bf16 %v275_v58, %v274_v57  ;;  %v633_v62 = vpack.c.bf16 %v277_v61, %v276_v60  ;;  %v278_v63 = vld [vmem:[#allocation8 + $0x60] sm:$0xff]  ;;  %v279_v2 = vld [vmem:[#allocation8 + $0x68] sm:$0xff]  ;;  %v280_v4 = vld [vmem:[#allocation8 + $0x70] sm:$0xff] }
  0x59   :  { %v636_v3 = vpack.c.bf16 %v279_v2, %v278_v63  ;;  %v281_v5 = vld [vmem:[#allocation8 + $0x78] sm:$0xff] }
  0x5a   :  { %589 = vmatpush1.bf16.msra.mxu1 %v588_v17  ;;  %v639_v6 = vpack.c.bf16 %v281_v5, %v280_v4  ;;  %v472_v31 = vld [vmem:[%s949_s5] ss:$0 sm:$0xff] }
  0x5b   :  { %590 = vmatprep.subr.bf16.mxu1 %v807_v1  ;;  %622 = vmatpush3.bf16.msra.mxu0 %v621_v50 }
  0x5c   :  { %623 = vmatprep.subr.bf16.mxu0 %v807_v1 }
  0x5e   :  { %592 = vmatpush1.bf16.msra.mxu1 %v591_v20 }
  0x5f   :  { %593 = vmatprep.subr.bf16.mxu1 %v807_v1  ;;  %625 = vmatpush3.bf16.msra.mxu0 %v624_v53 }
  0x60   :  { %626 = vmatprep.subr.bf16.mxu0 %v807_v1 }
  0x62   :  { %595 = vmatpush1.bf16.msra.mxu1 %v594_v23 }
  0x63   :  { %596 = vmatprep.subr.bf16.mxu1 %v807_v1  ;;  %628 = vmatpush3.bf16.msra.mxu0 %v627_v56 }
  0x64   :  { %629 = vmatprep.subr.bf16.mxu0 %v807_v1 }
  0x66   :  { %598 = vmatpush1.bf16.msra.mxu1 %v597_v26 }
  0x67   :  { %599 = vmatprep.subr.bf16.mxu1 %v807_v1  ;;  %631 = vmatpush3.bf16.msra.mxu0 %v630_v59 }
  0x68   :  { %632 = vmatprep.subr.bf16.mxu0 %v807_v1 }
  0x6a   :  { %601 = vmatpush1.bf16.msra.mxu1 %v600_v29 }
  0x6b   :  { %602 = vmatprep.subr.bf16.mxu1 %v807_v1  ;;  %634 = vmatpush3.bf16.msra.mxu0 %v633_v62 }
  0x6c   :  { %635 = vmatprep.subr.bf16.mxu0 %v807_v1 }
  0x6e   :  { %604 = vmatpush1.bf16.msra.mxu1 %v603_v32 }
  0x6f   :  { %605 = vmatprep.subr.bf16.mxu1 %v807_v1  ;;  %637 = vmatpush3.bf16.msra.mxu0 %v636_v3 }
  0x70   :  { %638 = vmatprep.subr.bf16.mxu0 %v807_v1 }
  0x72   :  { %607 = vmatpush1.bf16.msra.mxu1 %v606_v35 }
  0x73   :  { %608 = vmatprep.subr.bf16.mxu1 %v807_v1  ;;  %640 = vmatpush3.bf16.msra.mxu0 %v639_v6 }
  0x74   :  { %641 = vmatprep.subr.bf16.mxu0 %v807_v1 }
  0x76   :  { %610 = vmatpush1.bf16.msra.mxu1 %v609_v38 }
  0x77   :  { %611 = vmatprep.subr.bf16.mxu1 %v807_v1 }
  0x7a   :  { %613 = vmatpush1.bf16.msra.mxu1 %v612_v41 }
  0x7b   :  { %614 = vmatprep.subr.bf16.mxu1 %v807_v1 }
  0x7e   :  { %616 = vmatpush1.bf16.msra.mxu1 %v615_v44 }
 0x124   :  { %v176_v11 = vpop.f32.mrb[0].mxu1 }
 0x125   :  { %v178_v13 = vpop.f32.mrb[1].mxu1  ;;  %vm186_vm3 = vcmp.eq.f32.partialorder %v176_v11, %v184_v12 }
 0x126   :  { %vm187_vm2 = vcmp.eq.f32.partialorder %v178_v13, %v185_v10 }
 0x127   :  { %v468_v14 = vsel %vm187_vm2, 1.0, %v806_v0 }
 0x128   :  { %469 = vmatprep.mubr.msk.f32.mxu1 %vm192_vm1, %v468_v14 }
 0x129   :  { %470 = vmatmul.mubr.msk.f32.vlgmr.msra.gmra.mrb[2].mxu1 %vm186_vm3, %v808_v15 }
 0x1fc   :  { %v262_v16 = vpop.f32.mrb[2].mxu1 }
 0x1fd   :  { %v264_v17 = vpop.f32.mrb[3].mxu1  ;;  %540 = vmatmul.mubr.f32.vlgmr.msra.gmra.mrb[0].mxu0 %v262_v16 }
 0x1fe   :  { %643 = vmatpush3.bf16.msra.mxu0 %v618_v48  ;;  %574 = vmatprep.mubr.msk.f32.mxu0 %vm809_vm4, %v806_v0  ;;  %v352_v0 = vmul.f32 %v262_v16, %v262_v16 }
 0x1ff   :  { %644 = vmatprep.subr.bf16.mxu0 %v807_v1 }
 0x202   :  { %646 = vmatpush3.bf16.msra.mxu0 %v621_v50 }
 0x203   :  { %647 = vmatprep.subr.bf16.mxu0 %v807_v1 }
 0x206   :  { %649 = vmatpush3.bf16.msra.mxu0 %v624_v53 }
 0x207   :  { %650 = vmatprep.subr.bf16.mxu0 %v807_v1 }
 0x20a   :  { %652 = vmatpush3.bf16.msra.mxu0 %v627_v56 }
 0x20b   :  { %653 = vmatprep.subr.bf16.mxu0 %v807_v1 }
 0x20e   :  { %655 = vmatpush3.bf16.msra.mxu0 %v630_v59 }
 0x20f   :  { %656 = vmatprep.subr.bf16.mxu0 %v807_v1 }
 0x212   :  { %658 = vmatpush3.bf16.msra.mxu0 %v633_v62 }
 0x213   :  { %659 = vmatprep.subr.bf16.mxu0 %v807_v1 }
 0x216   :  { %661 = vmatpush3.bf16.msra.mxu0 %v636_v3 }
 0x217   :  { %662 = vmatprep.subr.bf16.mxu0 %v807_v1  ;;  %v471_v1 = vld [vmem:[%s948_s4] ss:$0 sm:$0xff] }
 0x21a   :  { %664 = vmatpush3.bf16.msra.mxu0 %v639_v6 }
 0x21d   :  { %575 = vmatmul.mubr.f32.vlgmr.msra.gmra.mrb[2].mxu0 %v352_v0 }
 0x2d0   :  { %v348_v18 = vpop.f32.mrb[0].mxu0 }
 0x2d1   :  { %v423_v19 = vmul.f32 0.03125, %v348_v18  ;;  %v541_v20 = vpop.f32.mrb[1].mxu0 }
 0x2d3   :  { %v428_v21 = vsub.f32 %v262_v16, %v423_v19  ;;  %v425_v23 = vmul.f32 %v423_v19, %v423_v19 }
 0x2f0   :  { %v419_v22 = vpop.f32.mrb[2].mxu0 }
 0x2f1   :  { %v424_v24 = vmul.f32 0.03125, %v419_v22  ;;  %v576_v25 = vpop.f32.mrb[3].mxu0 }
 0x2f3   :  { %v426_v26 = vsub.f32 %v424_v24, %v425_v23 }
 0x2f5   :  { %v427_v27 = vmax.f32 %v426_v26, 0.0 }
 0x2f7   :  { %v429_v28 = vadd.f32 1e-05, %v427_v27 }
 0x2f9   :  { %678 = vrsqrt.f32 %v429_v28 }
 0x303   :  { %v679_v29 = vpop.eup %678 }
 0x304   :  { %v431_v30 = vmul.f32 %v679_v29, %v428_v21 }
 0x306   :  { %v439_v32 = vmul.f32 %v471_v1, %v431_v30 }
 0x308   :  { %v447_v33 = vadd.f32 %v472_v31, %v439_v32 }
 0x30a   :  { %448 = vst [vmem:[#allocation10] sm:$0xff] %v447_v33 }
 0x30b   :  { %779 = shalt.err (!%p776_p8)
}
 0x30c   :  { %s780_s28 = scalar_lea.hbm %s950_s6, 128 }
 0x30d   :  { %p781_p9 = scmp.ne.s32.totalorder %s950_s6, %s780_s28  ;;  %p784_p10 = scmp.lt.u32.totalorder %s780_s28, %s950_s6 }
 0x30f   :  { %p786_p11 = pnand %p784_p10, %p781_p9 }
 0x311   :  { %789 = shalt.err (!%p786_p11)
}
 0x312   :  { %458 = dma.vmem_to_hbm [thread:$0]  %s456_s25, 128, %s950_s6, [#allocation4]  }
 0x313   :  { %796 = dma.done.wait [#allocation4], 128  }
 0x314   :  { %797 = vsyncadd [#allocation4], 4294967168 }
 0x315   :  { %462 = vsyncpa [#allocation3], 1 }
 0x316   :  { %463 = vsyncpa [#allocation6], 1 }
 0x317   :  { %464 = vsyncpa [#allocation9], 1 }
 0x318   :  { %465 = vsyncpa [#allocation4], 1 }

</bundles_post_ra>
